<compile_context>
chip_gen: v5e
topology: v5e:2x2
jax: 0.10.0
libtpu: 0.0.40
codegen_flags: <defaults>
</compile_context>

<pallas_src>
import jax
import jax.numpy as jnp
from jax import lax
from jax.experimental import pallas as pl
from jax.experimental.pallas import tpu as pltpu

_EPS = 1e-5


def _decoder_adain_kernel(content_ref, temporal_ref, w_ref, b_ref, alpha_ref, out_ref):
    x = content_ref[...].astype(jnp.float32)   # (tile_n, D)
    t = temporal_ref[...].astype(jnp.float32)  # (tile_n, D)
    d = x.shape[1]
    inv_d = 1.0 / d
    inv_dm1 = 1.0 / max(d - 1, 1)

    # ---- AdaIN: InstanceNorm1d on 2-D input -> per-row normalization over D
    # (biased variance, eps=1e-5), then * temporal.std(unbiased) + temporal.mean.
    # Two-pass statistics for numerical robustness.
    xm = jnp.sum(x, axis=1, keepdims=True) * inv_d
    xc = x - xm
    xv = jnp.sum(xc * xc, axis=1, keepdims=True) * inv_d
    x_norm = xc * lax.rsqrt(xv + _EPS)

    tm = jnp.sum(t, axis=1, keepdims=True) * inv_d
    tc = t - tm
    tv = jnp.sum(tc * tc, axis=1, keepdims=True) * inv_dm1   # torch.std(unbiased=True)
    ts = jnp.sqrt(tv)

    merged = x_norm * ts + tm                                # (tile_n, D) f32

    # ---- Last block only: Linear(D, D).  Weight was pre-transposed in the wrapper to
    # (D_in, D_out), so this is a native (M,K)x(K,N) MXU matmul: bf16 operands, f32 acc.
    y = jnp.dot(merged.astype(jnp.bfloat16), w_ref[...],
                preferred_element_type=jnp.float32) + b_ref[...]   # (tile_n, D)

    # ---- InstanceNorm1d on 2-D -> per-row normalization (biased var), two-pass ----
    ym = jnp.sum(y, axis=1, keepdims=True) * inv_d
    yc = y - ym
    yv = jnp.sum(yc * yc, axis=1, keepdims=True) * inv_d
    y_norm = yc * lax.rsqrt(yv + _EPS)

    # ---- PReLU (single shared alpha of the last block) ----
    alpha = alpha_ref[0]
    out = jnp.where(y_norm > 0, y_norm, alpha * y_norm)

    # dropout=0.0 -> identity (the PyTorch block doesn't even add a Dropout layer).
    out_ref[...] = out.astype(out_ref.dtype)


def _tile_bytes(tile_n, d):
    # content + temporal + out tiles (f32, double-buffered) + bf16 weight + f32 bias.
    return 3 * 2 * tile_n * d * 4 + 2 * d * d * 2 + 2 * d * 4


def _pick_tile_n(n, d):
    """Largest row-tile that (a) divides n, (b) fits comfortably in v7x's 64 MiB VMEM,
    and (c) when possible leaves >= 2 N-tiles so the parallel grid axis can shard
    across both TensorCores on v7x."""
    budget = 40 * 1024 * 1024
    best_single = None
    for t in (1024, 512, 256, 128, 64, 32, 16, 8):
        if n % t != 0:
            continue
        if _tile_bytes(t, d) > budget:
            continue
        if n // t >= 2:
            return t
        if best_single is None:
            best_single = t
    return best_single if best_single is not None else n   # small / odd n: one tile


@jax.jit
def decoder_adain_forward(encoded_content, encoded_temporal, w_stack, b_stack, alpha_stack):
    """Mirrors DecoderAdaIN.forward with merge_mode='adain', norm='instance', dropout=0.

    w_stack:     (num_blocks, D, D)  PyTorch Linear weights (out, in)
    b_stack:     (num_blocks, D)     Linear biases
    alpha_stack: (num_blocks,)       PReLU alphas

    Only the LAST block's parameters are consumed: the PyTorch loop feeds every block
    the same AdaIN result and returns only the final block's output.
    # TODO(synk): 'concat' merge mode, 'batch'/'none' norms and dropout>0 are not
    # exercised here (the chosen config is adain + instance + dropout 0.0).
    """
    n, d = encoded_content.shape
    tile_n = _pick_tile_n(n, d)
    n_tiles = n // tile_n

    # Last block's params only; pre-transpose W to (D_in, D_out) for a native MXU layout.
    w_last = w_stack[-1].T.astype(jnp.bfloat16)            # (D_in, D_out) bf16
    b_last = b_stack[-1].reshape(1, d).astype(jnp.float32)  # (1, D)
    alpha_last = alpha_stack[-1].reshape(1).astype(jnp.float32)

    # Exact buffer sum + small headroom; capped at 48 MiB so the request is valid on
    # v7x's 64 MiB VMEM while leaving room for compiler-internal scratch.
    vmem_bytes = _tile_bytes(tile_n, d)
    vmem_limit = min(48 * 1024 * 1024,
                     max(vmem_bytes + (4 << 20), 32 * 1024 * 1024))

    return pl.pallas_call(
        _decoder_adain_kernel,
        out_shape=jax.ShapeDtypeStruct((n, d), jnp.float32),
        grid=(n_tiles,),
        in_specs=[
            pl.BlockSpec((tile_n, d), lambda i: (i, 0)),      # content tile
            pl.BlockSpec((tile_n, d), lambda i: (i, 0)),      # temporal tile
            pl.BlockSpec((d, d), lambda i: (0, 0)),           # W_last^T (bf16, resident)
            pl.BlockSpec((1, d), lambda i: (0, 0)),           # bias (resident)
            pl.BlockSpec(memory_space=pltpu.MemorySpace.SMEM),  # alpha (1,)
        ],
        out_specs=pl.BlockSpec((tile_n, d), lambda i: (i, 0)),
        compiler_params=pltpu.CompilerParams(
            dimension_semantics=("parallel",),
            vmem_limit_bytes=vmem_limit,
        ),
    )(encoded_content, encoded_temporal, w_last, b_last, alpha_last)


def init_decoder_params(key, d, num_blocks):
    """Deterministic synthetic params, stacked per-block: W (out,in), bias, PReLU alpha."""
    ws, bs, alphas = [], [], []
    for i in range(num_blocks):
        kw, kb, key = jax.random.split(jax.random.fold_in(key, i), 3)
        bound = 1.0 / jnp.sqrt(d)
        ws.append(jax.random.uniform(kw, (d, d), jnp.float32, -bound, bound))
        bs.append(jax.random.uniform(kb, (d,), jnp.float32, -bound, bound))
        alphas.append(jnp.float32(0.25))  # nn.PReLU() default init
    return jnp.stack(ws), jnp.stack(bs), jnp.stack(alphas)


def _reference_forward(content, temporal, w_stack, b_stack, alpha_stack):
    """Pure-JAX reference mirroring the PyTorch module loop (runs ALL blocks; the last
    block's output wins).  Matmul operands are bf16-rounded like the kernel's MXU path."""
    eps = 1e-5
    d = content.shape[1]
    xm = jnp.mean(content, axis=1, keepdims=True)
    xv = jnp.mean((content - xm) ** 2, axis=1, keepdims=True)
    x_norm = (content - xm) / jnp.sqrt(xv + eps)
    tm = jnp.mean(temporal, axis=1, keepdims=True)
    ts = jnp.sqrt(jnp.sum((temporal - tm) ** 2, axis=1, keepdims=True) / (d - 1))
    merged = x_norm * ts + tm
    out = None
    for i in range(w_stack.shape[0]):
        y = jnp.dot(merged.astype(jnp.bfloat16).astype(jnp.float32),
                    w_stack[i].astype(jnp.bfloat16).astype(jnp.float32).T) + b_stack[i]
        ym = jnp.mean(y, axis=1, keepdims=True)
        yv = jnp.mean((y - ym) ** 2, axis=1, keepdims=True)
        y_norm = (y - ym) / jnp.sqrt(yv + eps)
        out = jnp.where(y_norm > 0, y_norm, alpha_stack[i] * y_norm)
    return out


if __name__ == "__main__":
    key = jax.random.PRNGKey(0)
    N, D = 8, 128                 # batch, decoder_input_size
    decoder_block_num = 2
    # decoder_norm = ['instance', 'instance'], decoder_dropout = [0.0, 0.0], merge_mode='adain'

    kc, kt, kp = jax.random.split(key, 3)
    encoded_content = jax.random.normal(kc, (N, D), jnp.float32)
    encoded_temporal = jax.random.normal(kt, (N, D), jnp.float32)
    w_stack, b_stack, alpha_stack = init_decoder_params(kp, D, decoder_block_num)

    out = decoder_adain_forward(encoded_content, encoded_temporal,
                                w_stack, b_stack, alpha_stack)
    out = jax.block_until_ready(out)

    assert out.shape == (N, D) and out.dtype == jnp.float32
    ref = _reference_forward(encoded_content, encoded_temporal, w_stack, b_stack, alpha_stack)
    assert bool(jnp.all(jnp.isfinite(out)))
    assert bool(jnp.allclose(out, ref, atol=5e-3, rtol=5e-3)), float(jnp.max(jnp.abs(out - ref)))
    print("KERNEL_OK")
</pallas_src>

<mosaic_0001>
module attributes {stable_mosaic.version = 11 : i64} {
  func.func @_decoder_adain_kernel(%arg0: i32, %arg1: memref<8x128xf32, #tpu.memory_space<vmem>>, %arg2: memref<8x128xf32, #tpu.memory_space<vmem>>, %arg3: memref<128x128xbf16, #tpu.memory_space<vmem>>, %arg4: memref<1x128xf32, #tpu.memory_space<vmem>>, %arg5: memref<1xf32, #tpu.memory_space<smem>>, %arg6: memref<8x128xf32, #tpu.memory_space<vmem>>) attributes {dimension_semantics = [#tpu.dimension_semantics<parallel>], iteration_bounds = array<i64: 1>, scalar_prefetch = 0 : i64, scratch_operands = 0 : i64, tpu.core_type = #tpu.core_type<tc>, window_params = [{transform_indices = @transform_0, window_bounds = array<i64: 8, 128>}, {transform_indices = @transform_1, window_bounds = array<i64: 8, 128>}, {pipeline_mode = #tpu.pipeline_mode<synchronous>, transform_indices = @transform_2, window_bounds = array<i64: 128, 128>}, {pipeline_mode = #tpu.pipeline_mode<synchronous>, transform_indices = @transform_3, window_bounds = array<i64: 1, 128>}, {transform_indices = @transform_4, window_bounds = array<i64: 1>}, {transform_indices = @transform_5, window_bounds = array<i64: 8, 128>}]} {
    %c0 = arith.constant 0 : index
    %c0_0 = arith.constant 0 : index
    %0 = vector.load %arg1[%c0, %c0_0] : memref<8x128xf32, #tpu.memory_space<vmem>>, vector<8x128xf32>
    %c0_1 = arith.constant 0 : index
    %c0_2 = arith.constant 0 : index
    %1 = vector.load %arg2[%c0_1, %c0_2] : memref<8x128xf32, #tpu.memory_space<vmem>>, vector<8x128xf32>
    %cst = arith.constant dense<0.000000e+00> : vector<8xf32>
    %2 = vector.multi_reduction <add>, %0, %cst [1] : vector<8x128xf32> to vector<8xf32>
    %3 = vector.shape_cast %2 : vector<8xf32> to vector<8x1xf32>
    %cst_3 = arith.constant 7.812500e-03 : f32
    %4 = vector.broadcast %cst_3 : f32 to vector<8x1xf32>
    %5 = arith.mulf %3, %4 : vector<8x1xf32>
    %6 = vector.broadcast %5 : vector<8x1xf32> to vector<8x128xf32>
    %7 = arith.subf %0, %6 : vector<8x128xf32>
    %8 = arith.mulf %7, %7 : vector<8x128xf32>
    %cst_4 = arith.constant dense<0.000000e+00> : vector<8xf32>
    %9 = vector.multi_reduction <add>, %8, %cst_4 [1] : vector<8x128xf32> to vector<8xf32>
    %10 = vector.shape_cast %9 : vector<8xf32> to vector<8x1xf32>
    %cst_5 = arith.constant 7.812500e-03 : f32
    %11 = vector.broadcast %cst_5 : f32 to vector<8x1xf32>
    %12 = arith.mulf %10, %11 : vector<8x1xf32>
    %cst_6 = arith.constant 9.99999974E-6 : f32
    %13 = vector.broadcast %cst_6 : f32 to vector<8x1xf32>
    %14 = arith.addf %12, %13 : vector<8x1xf32>
    %15 = math.rsqrt %14 : vector<8x1xf32>
    %16 = vector.broadcast %15 : vector<8x1xf32> to vector<8x128xf32>
    %17 = arith.mulf %7, %16 : vector<8x128xf32>
    %cst_7 = arith.constant dense<0.000000e+00> : vector<8xf32>
    %18 = vector.multi_reduction <add>, %1, %cst_7 [1] : vector<8x128xf32> to vector<8xf32>
    %19 = vector.shape_cast %18 : vector<8xf32> to vector<8x1xf32>
    %cst_8 = arith.constant 7.812500e-03 : f32
    %20 = vector.broadcast %cst_8 : f32 to vector<8x1xf32>
    %21 = arith.mulf %19, %20 : vector<8x1xf32>
    %22 = vector.broadcast %21 : vector<8x1xf32> to vector<8x128xf32>
    %23 = arith.subf %1, %22 : vector<8x128xf32>
    %24 = arith.mulf %23, %23 : vector<8x128xf32>
    %cst_9 = arith.constant dense<0.000000e+00> : vector<8xf32>
    %25 = vector.multi_reduction <add>, %24, %cst_9 [1] : vector<8x128xf32> to vector<8xf32>
    %26 = vector.shape_cast %25 : vector<8xf32> to vector<8x1xf32>
    %cst_10 = arith.constant 0.00787401571 : f32
    %27 = vector.broadcast %cst_10 : f32 to vector<8x1xf32>
    %28 = arith.mulf %26, %27 : vector<8x1xf32>
    %29 = math.sqrt %28 : vector<8x1xf32>
    %30 = vector.broadcast %29 : vector<8x1xf32> to vector<8x128xf32>
    %31 = arith.mulf %17, %30 : vector<8x128xf32>
    %32 = vector.broadcast %21 : vector<8x1xf32> to vector<8x128xf32>
    %33 = arith.addf %31, %32 : vector<8x128xf32>
    %34 = arith.truncf %33 : vector<8x128xf32> to vector<8x128xbf16>
    %c0_11 = arith.constant 0 : index
    %c0_12 = arith.constant 0 : index
    %35 = vector.load %arg3[%c0_11, %c0_12] : memref<128x128xbf16, #tpu.memory_space<vmem>>, vector<128x128xbf16>
    %cst_13 = arith.constant dense<0.000000e+00> : vector<8x128xf32>
    %36 = tpu.matmul %34, %35, %cst_13 {dimension_numbers = #tpu.dot_dimension_numbers<[1], [0], [0], [1], [0, 0, 1, 1], [], []>} : vector<8x128xbf16>, vector<128x128xbf16>, vector<8x128xf32> -> vector<8x128xf32>
    %c0_14 = arith.constant 0 : index
    %c0_15 = arith.constant 0 : index
    %37 = vector.load %arg4[%c0_14, %c0_15] : memref<1x128xf32, #tpu.memory_space<vmem>>, vector<1x128xf32>
    %38 = vector.broadcast %37 : vector<1x128xf32> to vector<8x128xf32>
    %39 = arith.addf %36, %38 : vector<8x128xf32>
    %cst_16 = arith.constant dense<0.000000e+00> : vector<8xf32>
    %40 = vector.multi_reduction <add>, %39, %cst_16 [1] : vector<8x128xf32> to vector<8xf32>
    %41 = vector.shape_cast %40 : vector<8xf32> to vector<8x1xf32>
    %cst_17 = arith.constant 7.812500e-03 : f32
    %42 = vector.broadcast %cst_17 : f32 to vector<8x1xf32>
    %43 = arith.mulf %41, %42 : vector<8x1xf32>
    %44 = vector.broadcast %43 : vector<8x1xf32> to vector<8x128xf32>
    %45 = arith.subf %39, %44 : vector<8x128xf32>
    %46 = arith.mulf %45, %45 : vector<8x128xf32>
    %cst_18 = arith.constant dense<0.000000e+00> : vector<8xf32>
    %47 = vector.multi_reduction <add>, %46, %cst_18 [1] : vector<8x128xf32> to vector<8xf32>
    %48 = vector.shape_cast %47 : vector<8xf32> to vector<8x1xf32>
    %cst_19 = arith.constant 7.812500e-03 : f32
    %49 = vector.broadcast %cst_19 : f32 to vector<8x1xf32>
    %50 = arith.mulf %48, %49 : vector<8x1xf32>
    %cst_20 = arith.constant 9.99999974E-6 : f32
    %51 = vector.broadcast %cst_20 : f32 to vector<8x1xf32>
    %52 = arith.addf %50, %51 : vector<8x1xf32>
    %53 = math.rsqrt %52 : vector<8x1xf32>
    %54 = vector.broadcast %53 : vector<8x1xf32> to vector<8x128xf32>
    %55 = arith.mulf %45, %54 : vector<8x128xf32>
    %c0_21 = arith.constant 0 : index
    %56 = memref.load %arg5[%c0_21] : memref<1xf32, #tpu.memory_space<smem>>
    %cst_22 = arith.constant 0.000000e+00 : f32
    %57 = vector.broadcast %cst_22 : f32 to vector<8x128xf32>
    %58 = arith.cmpf ogt, %55, %57 : vector<8x128xf32>
    %59 = vector.broadcast %56 : f32 to vector<8x128xf32>
    %60 = arith.mulf %59, %55 : vector<8x128xf32>
    %61 = arith.select %58, %55, %60 : vector<8x128xi1>, vector<8x128xf32>
    %c0_23 = arith.constant 0 : index
    %c0_24 = arith.constant 0 : index
    %62 = vector.load %arg6[%c0_23, %c0_24] : memref<8x128xf32, #tpu.memory_space<vmem>>, vector<8x128xf32>
    tpu.vector_store %arg6[%c0_23, %c0_24], %61 {strides = array<i32>} : memref<8x128xf32, #tpu.memory_space<vmem>>, vector<8x128xf32>,
    return
  }
  func.func @transform_0(%arg0: i32) -> (i32, i32) {
    %c0_i32 = arith.constant 0 : i32
    %c0_i32_0 = arith.constant 0 : i32
    return %arg0, %c0_i32 : i32, i32
  }
  func.func @transform_1(%arg0: i32) -> (i32, i32) {
    %c0_i32 = arith.constant 0 : i32
    %c0_i32_0 = arith.constant 0 : i32
    return %arg0, %c0_i32 : i32, i32
  }
  func.func @transform_2(%arg0: i32) -> (i32, i32) {
    %c0_i32 = arith.constant 0 : i32
    %c0_i32_0 = arith.constant 0 : i32
    %c0_i32_1 = arith.constant 0 : i32
    return %c0_i32, %c0_i32_0 : i32, i32
  }
  func.func @transform_3(%arg0: i32) -> (i32, i32) {
    %c0_i32 = arith.constant 0 : i32
    %c0_i32_0 = arith.constant 0 : i32
    %c0_i32_1 = arith.constant 0 : i32
    return %c0_i32, %c0_i32_0 : i32, i32
  }
  func.func @transform_4(%arg0: i32) -> i32 {
    %c0_i32 = arith.constant 0 : i32
    %c0_i32_0 = arith.constant 0 : i32
    return %c0_i32 : i32
  }
  func.func @transform_5(%arg0: i32) -> (i32, i32) {
    %c0_i32 = arith.constant 0 : i32
    %c0_i32_0 = arith.constant 0 : i32
    return %arg0, %c0_i32 : i32, i32
  }
}

</mosaic_0001>

<bundles_post_ra>
// kernel: decoder_adain_forward.1
= control target key start
LH: loop header
LB: loop body
LE: loop exit
PB: predicated region body
PF: predicated region fallthrough
CT: control target
= control target key end

     0   :  { %s334_s0 = inlined_call_operand.vmem [shape: f32[8,128], index: 0, kind: input, shape index: {}]   ;;  %s335_s1 = inlined_call_operand.vmem [shape: f32[8,128], index: 1, kind: input, shape index: {}]   ;;  %s336_s2 = inlined_call_operand.vmem [shape: bf16[128,128], index: 2, kind: input, shape index: {}]   ;;  %s337_s3 = inlined_call_operand.vmem [shape: f32[1,128], index: 3, kind: input, shape index: {}]   ;;  %s338_s4 = inlined_call_operand.<no memory space> [shape: f32[1], index: 4, kind: input, shape index: {}]   ;;  %s339_s5 = inlined_call_operand.hbm [shape: f32[8,128], index: 5, kind: output, shape index: {}]  }
   0x1   :  { %v22_v0 = vld [vmem:[%s334_s0] sm:$0xff] }
   0x2   :  { %24 = vadd.xlane.f32.xlu0 %v22_v0 }
   0x3   :  { %11 = vsyncpa [#allocation4], 0  ;;  %v23_v1 = vld [vmem:[%s335_s1] sm:$0xff]  ;;  %v229_v10 = vld [vmem:[%s336_s2 + $0x38] sm:$0xff]  ;;  %v170_v62 = vstv %s338_s4  ;;  %s264_s13 = smov [#allocation3]   ;;  %s181_s17 = sshll.u32 %s339_s5, 4  ;;  %s182_s17 = int_to_ptr.hbm [resolvable:$true] %s181_s17 }
   0x4   :  { %135 = vmatpush.bf16.msra.mxu0 %v229_v10  ;;  %v228_v11 = vld [vmem:[%s336_s2 + $0x30] sm:$0xff]  ;;  %v227_v12 = vld [vmem:[%s336_s2 + $0x28] sm:$0xff]  ;;  %v226_v13 = vld [vmem:[%s336_s2 + $0x20] sm:$0xff]  ;;  %s179_s14 = sshll.u32 %s264_s13, 4  ;;  %s180_s14 = int_to_ptr.vmem [resolvable:$true] %s179_s14 }
   0x5   :  { %v225_v14 = vld [vmem:[%s336_s2 + $0x18] sm:$0xff]  ;;  %v224_v15 = vld [vmem:[%s336_s2 + $0x10] sm:$0xff]  ;;  %v223_v16 = vld [vmem:[%s336_s2 + $0x8] sm:$0xff] }
   0x6   :  { %v222_v17 = vld [vmem:[%s336_s2] sm:$0xff] }
   0x7   :  { %v231_v44 = vld [vmem:[%s337_s3] ss:$0 sm:$0xff] }
   0x8   :  { %136 = vmatpush.bf16.msra.mxu0 %v228_v11 }
   0xa   :  { %44 = vadd.xlane.f32.xlu0 %v23_v1 }
   0xc   :  { %137 = vmatpush.bf16.msra.mxu0 %v227_v12 }
  0x10   :  { %138 = vmatpush.bf16.msra.mxu0 %v226_v13 }
  0x14   :  { %139 = vmatpush.bf16.msra.mxu0 %v225_v14 }
  0x18   :  { %140 = vmatpush.bf16.msra.mxu0 %v224_v15 }
  0x1c   :  { %141 = vmatpush.bf16.msra.mxu0 %v223_v16 }
  0x20   :  { %142 = vmatpush.bf16.msra.mxu0 %v222_v17 }
  0x75   :  { %v25_v2 = vpop.xlane.xlu0 %24 }
  0x76   :  { %v26_v3 = vmul.f32 0.0078125, %v25_v2 }
  0x78   :  { %v27_v4 = vsub.f32 %v22_v0, %v26_v3 }
  0x7a   :  { %v28_v5 = vmul.f32 %v27_v4, %v27_v4 }
  0x7c   :  { %29 = vadd.xlane.f32.xlu1 %v28_v5 }
  0x7d   :  { %v45_v6 = vpop.xlane.xlu0 %44 }
  0x7e   :  { %v46_v7 = vmul.f32 0.0078125, %v45_v6 }
  0x80   :  { %v47_v8 = vsub.f32 %v23_v1, %v46_v7 }
  0x82   :  { %v48_v9 = vmul.f32 %v47_v8, %v47_v8 }
  0x84   :  { %49 = vadd.xlane.f32.xlu1 %v48_v9 }
  0xef   :  { %v30_v18 = vpop.xlane.xlu1 %29 }
  0xf0   :  { %v31_v19 = vmul.f32 0.0078125, %v30_v18 }
  0xf2   :  { %v32_v20 = vadd.f32 1e-05, %v31_v19 }
  0xf4   :  { %232 = vrsqrt.f32 %v32_v20  ;;  %vm39_vm1 = vweird.f32 %v32_v20 }
  0xf7   :  { %v50_v21 = vpop.xlane.xlu1 %49 }
  0xf8   :  { %v51_v22 = vmul.f32 0.007874016, %v50_v21 }
  0xfa   :  { %v233_v23 = vpop.eup %232  ;;  %234 = vrsqrt.f32 %v51_v22  ;;  %vm59_vm3 = vcmp.eq.f32.partialorder %v51_v22, inf  ;;  %v62_v37 = vand.u32 2147483648, %v51_v22  ;;  %vm61_vm4 = vcmp.eq.f32.partialorder %v51_v22, 0.0 }
  0xfb   :  { %v34_v24 = vmul.f32 %v233_v23, %v32_v20  ;;  %vm40_vm0 = vweird.f32 %v233_v23 }
  0xfc   :  { %vm41_vm2 = vmor %vm39_vm1, %vm40_vm0 }
  0xfd   :  { %v35_v25 = vmul.f32 %v233_v23, %v34_v24 }
  0xff   :  { %v36_v26 = vmul.f32 0.5, %v35_v25 }
 0x100   :  { %v235_v27 = vpop.eup %234 }
 0x101   :  { %v53_v28 = vmul.f32 %v235_v27, %v51_v22  ;;  %v37_v29 = vsub.f32 1.5, %v36_v26 }
 0x103   :  { %v54_v30 = vmul.f32 %v235_v27, %v53_v28  ;;  %v38_v32 = vmul.f32 %v233_v23, %v37_v29 }
 0x105   :  { %v55_v31 = vmul.f32 0.5, %v54_v30  ;;  %v42_v35 = vsel %vm41_vm2, %v233_v23, %v38_v32 }
 0x106   :  { %v43_v38 = vmul.f32 %v42_v35, %v27_v4 }
 0x107   :  { %v56_v33 = vsub.f32 1.5, %v55_v31 }
 0x109   :  { %v57_v34 = vmul.f32 %v235_v27, %v56_v33 }
 0x10b   :  { %v58_v36 = vmul.f32 %v57_v34, %v51_v22 }
 0x10d   :  { %v60_v39 = vsel %vm59_vm3, %v51_v22, %v58_v36 }
 0x10e   :  { %v63_v40 = vsel %vm61_vm4, %v62_v37, %v60_v39 }
 0x10f   :  { %v64_v41 = vmul.f32 %v63_v40, %v43_v38 }
 0x111   :  { %v65_v42 = vadd.f32 %v64_v41, %v46_v7 }
 0x113   :  { %v66_v43 = vpack.c.bf16 %v65_v42, %v65_v42 }
 0x115   :  { %143 = vmatmul.bf16.vlgmr.msra.gmra.mxu0 %v66_v43 }
 0x192   :  { %v144_v45 = vpop.f32.mrf.mxu0 }
 0x193   :  { %v145_v46 = vadd.f32 %v231_v44, %v144_v45 }
 0x195   :  { %148 = vadd.xlane.f32.xlu2 %v145_v46 }
 0x19a   :  { %v146_v47 = vpop.f32.mrf.mxu0 }
 0x208   :  { %v149_v48 = vpop.xlane.xlu2 %148 }
 0x209   :  { %v150_v49 = vmul.f32 0.0078125, %v149_v48 }
 0x20b   :  { %v151_v50 = vsub.f32 %v145_v46, %v150_v49 }
 0x20d   :  { %v152_v51 = vmul.f32 %v151_v50, %v151_v50 }
 0x20f   :  { %153 = vadd.xlane.f32.xlu2 %v152_v51 }
 0x282   :  { %v154_v52 = vpop.xlane.xlu2 %153 }
 0x283   :  { %v155_v53 = vmul.f32 0.0078125, %v154_v52 }
 0x285   :  { %v156_v54 = vadd.f32 1e-05, %v155_v53 }
 0x287   :  { %236 = vrsqrt.f32 %v156_v54  ;;  %vm163_vm6 = vweird.f32 %v156_v54 }
 0x28d   :  { %v237_v55 = vpop.eup %236 }
 0x28e   :  { %v158_v56 = vmul.f32 %v237_v55, %v156_v54  ;;  %vm164_vm5 = vweird.f32 %v237_v55 }
 0x28f   :  { %vm165_vm7 = vmor %vm163_vm6, %vm164_vm5 }
 0x290   :  { %v159_v57 = vmul.f32 %v237_v55, %v158_v56 }
 0x292   :  { %v160_v58 = vmul.f32 0.5, %v159_v57 }
 0x294   :  { %v161_v59 = vsub.f32 1.5, %v160_v58 }
 0x296   :  { %v162_v60 = vmul.f32 %v237_v55, %v161_v59 }
 0x298   :  { %v166_v61 = vsel %vm165_vm7, %v237_v55, %v162_v60 }
 0x299   :  { %v167_v63 = vmul.f32 %v166_v61, %v151_v50 }
 0x29b   :  { %vm169_vm8 = vcmp.gt.f32.partialorder %v167_v63, 0.0  ;;  %v171_v0 = vmul.f32 %v170_v62, %v167_v63 }
 0x29d   :  { %v172_v1 = vsel %vm169_vm8, %v167_v63, %v171_v0 }
 0x29e   :  { %173 = vst [vmem:[#allocation3] sm:$0xff] %v172_v1 }
 0x29f   :  { %184 = dma.vmem_to_hbm [thread:$0]  %s180_s14, 128, %s182_s17, [#allocation4]  }
 0x2a0   :  { %262 = dma.done.wait [#allocation4], 128  }
 0x2a1   :  { %263 = vsyncadd [#allocation4], 4294967168 }
 0x2a2   :  { %189 = vsyncpa [#allocation4], 1 }

</bundles_post_ra>
